<compile_context>
chip_gen: v5e
topology: v5e:2x2
jax: 0.10.0
libtpu: 0.0.40
codegen_flags: <defaults>
</compile_context>

<pallas_src>
import numpy as np
import jax
import jax.numpy as jnp
from jax.experimental import pallas as pl
from jax.experimental.pallas import tpu as pltpu


def _cdiv(a, b):
    return (a + b - 1) // b


def positional_encoding_3d(coords, max_freq: int = 10):
    """JAX port of the PyTorch positional_encoding_3d (init-time glue)."""
    freqs = (2.0 ** np.arange(max_freq)).astype(np.float32)
    cols = []
    for i in range(coords.shape[1]):
        pos = coords[:, i:i + 1]
        enc = []
        for f in freqs:
            enc.append(jnp.sin(pos * f))
            enc.append(jnp.cos(pos * f))
        cols.append(jnp.concatenate(enc, axis=-1))
    return jnp.concatenate(cols, axis=-1)


def _inr_kernel(coords_ref, w1t_ref, b1_ref, w2t_ref, b2_ref, w3_ref, b3_ref,
                o_ref):
    """Transposed MLP on one tile of TN coordinate rows.

    coords_ref : (F, TN)  bf16   (feature-major coordinate encodings)
    w1t_ref    : (H, F)   bf16   (W1[:F].T)
    b1_ref     : (H, 1)   f32    (enc(x) @ W1[F:] + b1, transposed)
    w2t_ref    : (H, H)   bf16   (W2.T)
    b2_ref     : (H, 1)   f32
    w3_ref     : (H, 1)   f32
    b3_ref     : (1, 1)   f32
    o_ref      : (1, 1, TN) f32  (lane-dense output)
    """
    # Layer 1: (H,F) @ (F,TN) on the MXU, f32 accumulation.
    h = jnp.dot(w1t_ref[...], coords_ref[...],
                preferred_element_type=jnp.float32)
    h = jnp.maximum(h + b1_ref[...], 0.0)
    # Layer 2: (H,H) @ (H,TN); feed the MXU bf16, keep elementwise math f32.
    h = jnp.dot(w2t_ref[...], h.astype(w2t_ref.dtype),
                preferred_element_type=jnp.float32)
    h = jnp.maximum(h + b2_ref[...], 0.0)
    # Layer 3 (output width 1): VPU multiply + sublane reduction instead of a
    # 1-wide MXU matmul; result (1, TN) is already lane-dense.
    y = jnp.sum(h * w3_ref[...], axis=0, keepdims=True) + b3_ref[...]
    o_ref[...] = y[None]


class ImplicitNeuralNetwork:
    def __init__(self, size, hidden_dim=32, max_freq=10, key=None,
                 row_tile_cap=4096):
        if key is None:
            key = jax.random.PRNGKey(0)
        self.size = list(size)
        self.max_freq = max_freq
        self.hidden_dim = hidden_dim
        in_dim = (len(size) + 1) * max_freq * 2
        self.coord_feat = len(size) * max_freq * 2

        # Precomputed coordinate grid + its positional encoding (as in __init__).
        ranges = [jnp.linspace(0.0, s - 1.0, s, dtype=jnp.float32) for s in size]
        grids = jnp.meshgrid(*ranges, indexing="ij")
        coords = jnp.stack([g.reshape(-1) for g in grids], axis=-1)
        self.encoded_coords = positional_encoding_3d(coords, max_freq)  # (N, F) f32

        n_rows = self.encoded_coords.shape[0]
        self.n_rows = n_rows
        # Large row tile (multiple of 128); pad N so the tile divides it exactly.
        self.tn = int(min(row_tile_cap, 128 * _cdiv(n_rows, 128)))
        self.n_pad = int(self.tn * _cdiv(n_rows, self.tn))

        # Feature-major bf16 copy of the encodings for the kernel.
        enc_t = jnp.transpose(self.encoded_coords)                # (F, N)
        if self.n_pad > n_rows:
            enc_t = jnp.pad(enc_t, ((0, 0), (0, self.n_pad - n_rows)))
        self.coords_T_bf16 = enc_t.astype(jnp.bfloat16)           # (F, N_pad)

        # Deterministic parameter init (PyTorch-Linear-style uniform bounds).
        def linear(k, fan_in, fan_out):
            kw, kb = jax.random.split(k)
            bound = 1.0 / np.sqrt(fan_in)
            w = jax.random.uniform(kw, (fan_in, fan_out), jnp.float32, -bound, bound)
            b = jax.random.uniform(kb, (1, fan_out), jnp.float32, -bound, bound)
            return w, b

        k1, k2, k3 = jax.random.split(key, 3)
        self.w1, self.b1 = linear(k1, in_dim, hidden_dim)   # (in_dim, H), (1, H)
        self.w2, self.b2 = linear(k2, hidden_dim, hidden_dim)
        self.w3, self.b3 = linear(k3, hidden_dim, 1)         # (H, 1), (1, 1)

        # Kernel-side parameter layouts.
        self.w1c = self.w1[:self.coord_feat]                  # (F, H) f32 (reference)
        self.w1x = self.w1[self.coord_feat:]                  # (2*max_freq, H) f32
        self.w1c_T = jnp.transpose(self.w1c).astype(jnp.bfloat16)  # (H, F) bf16
        self.w2_T = jnp.transpose(self.w2).astype(jnp.bfloat16)    # (H, H) bf16
        self.b2_col = jnp.transpose(self.b2)                  # (H, 1) f32
        self.w3_col = self.w3                                 # (H, 1) f32
        self.b3_sc = self.b3                                  # (1, 1) f32

    # -------------------- Pallas forward --------------------
    def forward(self, x):
        h = self.hidden_dim
        f = self.coord_feat
        tn = self.tn
        grid = self.n_pad // tn

        # x-dependent branch hoisted out of the kernel: enc(x) @ W1x + b1 is a
        # row-independent (H, 1) effective bias.
        xv = jnp.asarray(x, jnp.float32)
        freqs = jnp.asarray(2.0 ** np.arange(self.max_freq), jnp.float32)
        arg = xv * freqs                                             # (max_freq,)
        x_enc = jnp.stack([jnp.sin(arg), jnp.cos(arg)], axis=-1).reshape(1, -1)
        b1_eff = jnp.transpose(x_enc @ self.w1x + self.b1)           # (H, 1) f32

        full = lambda shape: pl.BlockSpec(shape, lambda i: (0, 0))

        y = pl.pallas_call(
            _inr_kernel,
            out_shape=jax.ShapeDtypeStruct((grid, 1, tn), jnp.float32),
            grid=(grid,),
            in_specs=[
                pl.BlockSpec((f, tn), lambda i: (0, i)),   # coords tile (feature-major)
                full((h, f)),                              # W1c^T
                full((h, 1)),                              # b1_eff
                full((h, h)),                              # W2^T
                full((h, 1)),                              # b2
                full((h, 1)),                              # w3
                full((1, 1)),                              # b3
            ],
            out_specs=pl.BlockSpec((1, 1, tn), lambda i: (i, 0, 0)),
            compiler_params=pltpu.CompilerParams(
                dimension_semantics=("parallel",)),
        )(self.coords_T_bf16, self.w1c_T, b1_eff, self.w2_T,
          self.b2_col, self.w3_col, self.b3_sc)

        s0, s1, s2 = self.size
        y_flat = y.reshape(-1)[: self.n_rows]
        # (s0, s1, s2, 1).permute(3, 0, 1, 2) with a single output channel.
        return y_flat.reshape(s0, s1, s2)[None, ...]

    # -------------------- pure-JAX reference --------------------
    def forward_ref(self, x):
        n = self.encoded_coords.shape[0]
        x_col = jnp.full((n, 1), x, dtype=jnp.float32)
        x_enc = positional_encoding_3d(x_col, self.max_freq)
        feat = jnp.concatenate([self.encoded_coords, x_enc], axis=-1)
        hh = jnp.maximum(feat @ self.w1 + self.b1, 0.0)
        hh = jnp.maximum(hh @ self.w2 + self.b2, 0.0)
        y = hh @ self.w3 + self.b3
        s0, s1, s2 = self.size
        return jnp.transpose(y.reshape(s0, s1, s2, -1), (3, 0, 1, 2))


if __name__ == "__main__":
    key = jax.random.PRNGKey(0)
    net = ImplicitNeuralNetwork(size=[8, 8, 8], hidden_dim=32, max_freq=10, key=key)

    x = 0.37  # scalar input, mirrors torch.full((N, 1), x) in the PyTorch forward
    out = net.forward(x)
    out = jax.block_until_ready(out)

    ref = net.forward_ref(x)
    assert out.shape == (1, 8, 8, 8), out.shape
    np.testing.assert_allclose(np.asarray(out), np.asarray(ref), rtol=2e-2, atol=2e-2)
    print("KERNEL_OK")
</pallas_src>

<mosaic_0001>
module attributes {stable_mosaic.version = 11 : i64} {
  func.func @_inr_kernel(%arg0: i32, %arg1: memref<60x512xbf16, #tpu.memory_space<vmem>>, %arg2: memref<32x60xbf16, #tpu.memory_space<vmem>>, %arg3: memref<32x1xf32, #tpu.memory_space<vmem>>, %arg4: memref<32x32xbf16, #tpu.memory_space<vmem>>, %arg5: memref<32x1xf32, #tpu.memory_space<vmem>>, %arg6: memref<32x1xf32, #tpu.memory_space<vmem>>, %arg7: memref<1x1xf32, #tpu.memory_space<vmem>>, %arg8: memref<1x1x512xf32, #tpu.memory_space<vmem>>) attributes {dimension_semantics = [#tpu.dimension_semantics<parallel>], iteration_bounds = array<i64: 1>, scalar_prefetch = 0 : i64, scratch_operands = 0 : i64, tpu.core_type = #tpu.core_type<tc>, window_params = [{transform_indices = @transform_0, window_bounds = array<i64: 60, 512>}, {pipeline_mode = #tpu.pipeline_mode<synchronous>, transform_indices = @transform_1, window_bounds = array<i64: 32, 60>}, {pipeline_mode = #tpu.pipeline_mode<synchronous>, transform_indices = @transform_2, window_bounds = array<i64: 32, 1>}, {pipeline_mode = #tpu.pipeline_mode<synchronous>, transform_indices = @transform_3, window_bounds = array<i64: 32, 32>}, {pipeline_mode = #tpu.pipeline_mode<synchronous>, transform_indices = @transform_4, window_bounds = array<i64: 32, 1>}, {pipeline_mode = #tpu.pipeline_mode<synchronous>, transform_indices = @transform_5, window_bounds = array<i64: 32, 1>}, {pipeline_mode = #tpu.pipeline_mode<synchronous>, transform_indices = @transform_6, window_bounds = array<i64: 1, 1>}, {transform_indices = @transform_7, window_bounds = array<i64: 1, 1, 512>}]} {
    %c0 = arith.constant 0 : index
    %c0_0 = arith.constant 0 : index
    %0 = vector.load %arg2[%c0, %c0_0] : memref<32x60xbf16, #tpu.memory_space<vmem>>, vector<32x60xbf16>
    %c0_1 = arith.constant 0 : index
    %c0_2 = arith.constant 0 : index
    %1 = vector.load %arg1[%c0_1, %c0_2] : memref<60x512xbf16, #tpu.memory_space<vmem>>, vector<60x512xbf16>
    %cst = arith.constant dense<0.000000e+00> : vector<32x512xf32>
    %2 = tpu.matmul %0, %1, %cst {dimension_numbers = #tpu.dot_dimension_numbers<[1], [0], [0], [1], [0, 0, 1, 1], [], []>} : vector<32x60xbf16>, vector<60x512xbf16>, vector<32x512xf32> -> vector<32x512xf32>
    %c0_3 = arith.constant 0 : index
    %c0_4 = arith.constant 0 : index
    %3 = vector.load %arg3[%c0_3, %c0_4] : memref<32x1xf32, #tpu.memory_space<vmem>>, vector<32x1xf32>
    %4 = vector.broadcast %3 : vector<32x1xf32> to vector<32x512xf32>
    %5 = arith.addf %2, %4 : vector<32x512xf32>
    %cst_5 = arith.constant 0.000000e+00 : f32
    %6 = vector.broadcast %cst_5 : f32 to vector<32x512xf32>
    %7 = arith.maximumf %5, %6 : vector<32x512xf32>
    %c0_6 = arith.constant 0 : index
    %c0_7 = arith.constant 0 : index
    %8 = vector.load %arg4[%c0_6, %c0_7] : memref<32x32xbf16, #tpu.memory_space<vmem>>, vector<32x32xbf16>
    %9 = arith.truncf %7 : vector<32x512xf32> to vector<32x512xbf16>
    %cst_8 = arith.constant dense<0.000000e+00> : vector<32x512xf32>
    %10 = tpu.matmul %8, %9, %cst_8 {dimension_numbers = #tpu.dot_dimension_numbers<[1], [0], [0], [1], [0, 0, 1, 1], [], []>} : vector<32x32xbf16>, vector<32x512xbf16>, vector<32x512xf32> -> vector<32x512xf32>
    %c0_9 = arith.constant 0 : index
    %c0_10 = arith.constant 0 : index
    %11 = vector.load %arg5[%c0_9, %c0_10] : memref<32x1xf32, #tpu.memory_space<vmem>>, vector<32x1xf32>
    %12 = vector.broadcast %11 : vector<32x1xf32> to vector<32x512xf32>
    %13 = arith.addf %10, %12 : vector<32x512xf32>
    %cst_11 = arith.constant 0.000000e+00 : f32
    %14 = vector.broadcast %cst_11 : f32 to vector<32x512xf32>
    %15 = arith.maximumf %13, %14 : vector<32x512xf32>
    %c0_12 = arith.constant 0 : index
    %c0_13 = arith.constant 0 : index
    %16 = vector.load %arg6[%c0_12, %c0_13] : memref<32x1xf32, #tpu.memory_space<vmem>>, vector<32x1xf32>
    %17 = vector.broadcast %16 : vector<32x1xf32> to vector<32x512xf32>
    %18 = arith.mulf %15, %17 : vector<32x512xf32>
    %cst_14 = arith.constant dense<0.000000e+00> : vector<512xf32>
    %19 = vector.multi_reduction <add>, %18, %cst_14 [0] : vector<32x512xf32> to vector<512xf32>
    %20 = vector.shape_cast %19 : vector<512xf32> to vector<1x512xf32>
    %c0_15 = arith.constant 0 : index
    %c0_16 = arith.constant 0 : index
    %21 = vector.load %arg7[%c0_15, %c0_16] : memref<1x1xf32, #tpu.memory_space<vmem>>, vector<1x1xf32>
    %22 = vector.broadcast %21 : vector<1x1xf32> to vector<1x512xf32>
    %23 = arith.addf %20, %22 : vector<1x512xf32>
    %24 = vector.shape_cast %23 : vector<1x512xf32> to vector<1x1x512xf32>
    %c0_17 = arith.constant 0 : index
    %c0_18 = arith.constant 0 : index
    %c0_19 = arith.constant 0 : index
    %25 = vector.load %arg8[%c0_17, %c0_18, %c0_19] : memref<1x1x512xf32, #tpu.memory_space<vmem>>, vector<1x1x512xf32>
    tpu.vector_store %arg8[%c0_17, %c0_18, %c0_19], %24 {strides = array<i32>} : memref<1x1x512xf32, #tpu.memory_space<vmem>>, vector<1x1x512xf32>,
    return
  }
  func.func @transform_0(%arg0: i32) -> (i32, i32) {
    %c0_i32 = arith.constant 0 : i32
    %c0_i32_0 = arith.constant 0 : i32
    return %c0_i32, %arg0 : i32, i32
  }
  func.func @transform_1(%arg0: i32) -> (i32, i32) {
    %c0_i32 = arith.constant 0 : i32
    %c0_i32_0 = arith.constant 0 : i32
    %c0_i32_1 = arith.constant 0 : i32
    return %c0_i32, %c0_i32_0 : i32, i32
  }
  func.func @transform_2(%arg0: i32) -> (i32, i32) {
    %c0_i32 = arith.constant 0 : i32
    %c0_i32_0 = arith.constant 0 : i32
    %c0_i32_1 = arith.constant 0 : i32
    return %c0_i32, %c0_i32_0 : i32, i32
  }
  func.func @transform_3(%arg0: i32) -> (i32, i32) {
    %c0_i32 = arith.constant 0 : i32
    %c0_i32_0 = arith.constant 0 : i32
    %c0_i32_1 = arith.constant 0 : i32
    return %c0_i32, %c0_i32_0 : i32, i32
  }
  func.func @transform_4(%arg0: i32) -> (i32, i32) {
    %c0_i32 = arith.constant 0 : i32
    %c0_i32_0 = arith.constant 0 : i32
    %c0_i32_1 = arith.constant 0 : i32
    return %c0_i32, %c0_i32_0 : i32, i32
  }
  func.func @transform_5(%arg0: i32) -> (i32, i32) {
    %c0_i32 = arith.constant 0 : i32
    %c0_i32_0 = arith.constant 0 : i32
    %c0_i32_1 = arith.constant 0 : i32
    return %c0_i32, %c0_i32_0 : i32, i32
  }
  func.func @transform_6(%arg0: i32) -> (i32, i32) {
    %c0_i32 = arith.constant 0 : i32
    %c0_i32_0 = arith.constant 0 : i32
    %c0_i32_1 = arith.constant 0 : i32
    return %c0_i32, %c0_i32_0 : i32, i32
  }
  func.func @transform_7(%arg0: i32) -> (i32, i32, i32) {
    %c0_i32 = arith.constant 0 : i32
    %c0_i32_0 = arith.constant 0 : i32
    %c0_i32_1 = arith.constant 0 : i32
    return %arg0, %c0_i32, %c0_i32_0 : i32, i32, i32
  }
}

</mosaic_0001>

<bundles_post_ra>
// kernel: tpu_custom_call.1
= control target key start
LH: loop header
LB: loop body
LE: loop exit
PB: predicated region body
PF: predicated region fallthrough
CT: control target
= control target key end

     0   :  { %s860_s0 = inlined_call_operand.hbm [shape: bf16[60,512], index: 0, kind: input, shape index: {}]   ;;  %s861_s1 = inlined_call_operand.vmem [shape: bf16[32,60], index: 1, kind: input, shape index: {}]   ;;  %s862_s2 = inlined_call_operand.vmem [shape: f32[32,1], index: 2, kind: input, shape index: {}]   ;;  %s863_s3 = inlined_call_operand.vmem [shape: bf16[32,32], index: 3, kind: input, shape index: {}]   ;;  %s864_s4 = inlined_call_operand.vmem [shape: f32[32,1], index: 4, kind: input, shape index: {}]   ;;  %s865_s5 = inlined_call_operand.vmem [shape: f32[32,1], index: 5, kind: input, shape index: {}]   ;;  %s866_s6 = inlined_call_operand.<no memory space> [shape: f32[1,1], index: 6, kind: input, shape index: {}]   ;;  %s867_s7 = inlined_call_operand.hbm [shape: f32[1,1,512], index: 7, kind: output, shape index: {}]  }
   0x1   :  { %v12_v0 = vstv %s866_s6 }
   0x2   :  { %13 = vst [vmem:[#allocation2] sm:$0x1] %v12_v0 }
   0x3   :  { %14 = vsyncpa [#allocation4], 0 }
   0x4   :  { %15 = vsyncpa [#allocation5], 0  ;;  %s20_s28 = sshll.u32 %s860_s0, 4  ;;  %s732_s29 = smov [#allocation3]   ;;  %s21_s28 = int_to_ptr.hbm [resolvable:$true] %s20_s28 }
   0x5   :  { %s22_s30 = sshll.u32 %s732_s29, 4  ;;  %s733_s8 = smov 256   ;;  %s23_s30 = int_to_ptr.vmem [resolvable:$true] %s22_s30 }
   0x6   :  { %s734_s9 = smov 16  }
   0x7   :  { %28 = dma.hbm_to_vmem [thread:$0]  %s21_s28, 2048, %s23_s30, [#allocation4], %s733_s8, %s733_s8, %s734_s9  }
   0x8   :  { %728 = dma.done.wait [#allocation4], 2048  }
   0x9   :  { %729 = vsyncadd [#allocation4], 4294965248  ;;  %v735_v1 = vmov 0   ;;  %vm183_vm0 = vcmask 1045504   ;;  %v614_v2 = vld [vmem:[#allocation3 + $0x60] sm:$0xf] }
   0xa   :  { %677 = vset.pattern.permute.xlu0 %v735_v1  ;;  %678 = vset.pattern.permute.xlu1 %v735_v1  ;;  %v668_v3 = vld [vmem:[#allocation3 + $0x6c] sm:$0x30]  ;;  %v666_v4 = vld [vmem:[#allocation3 + $0x64] sm:$0xf]  ;;  %v616_v6 = vld [vmem:[#allocation3 + $0x70] sm:$0x30] }
   0xb   :  { %679 = vset.pattern.permute.xlu2 %v735_v1  ;;  %v615_v5 = vor.u32 %v668_v3, %v614_v2  ;;  %v622_v7 = vld [vmem:[#allocation3 + $0x68] sm:$0xf]  ;;  %v669_v8 = vld [vmem:[#allocation3 + $0x74] sm:$0x30]  ;;  %v619_v9 = vor.u32 %v666_v4, %v616_v6  ;;  %v667_v11 = vld [vmem:[#allocation3 + $0x6c] sm:$0xf] }
   0xc   :  { %v623_v10 = vor.u32 %v669_v8, %v622_v7  ;;  %v624_v12 = vld [vmem:[#allocation3 + $0x78] sm:$0x30]  ;;  %v598_v13 = vld [vmem:[#allocation3 + $0x40] sm:$0xf]  ;;  %v664_v16 = vld [vmem:[#allocation3 + $0x4c] sm:$0xf0] }
   0xd   :  { %v185_v14 = vsel %vm183_vm0, %v615_v5, 0  ;;  %v627_v15 = vor.u32 %v667_v11, %v624_v12  ;;  %v662_v17 = vld [vmem:[#allocation3 + $0x44] sm:$0xf]  ;;  %v188_v18 = vsel %vm183_vm0, %v619_v9, 0  ;;  %v599_v20 = vor.u32 %v664_v16, %v598_v13  ;;  %v600_v21 = vld [vmem:[#allocation3 + $0x50] sm:$0xf0] }
   0xe   :  { %200 = vmatpush.bf16.msra.mxu0 %v185_v14  ;;  %v191_v19 = vsel %vm183_vm0, %v623_v10, 0  ;;  %v606_v22 = vld [vmem:[#allocation3 + $0x48] sm:$0xf]  ;;  %219 = vmatpush.bf16.msra.mxu1 %v188_v18  ;;  %v603_v24 = vor.u32 %v662_v17, %v600_v21  ;;  %v665_v25 = vld [vmem:[#allocation3 + $0x54] sm:$0xf0]  ;;  %v68_v27 = vld [vmem:[%s862_s2 + $0x10] sm:$0xff] }
   0xf   :  { %238 = vmatpush.bf16.msra.mxu2 %v191_v19  ;;  %v194_v23 = vsel %vm183_vm0, %v627_v15, 0  ;;  %v663_v26 = vld [vmem:[#allocation3 + $0x4c] sm:$0xf]  ;;  %v607_v28 = vor.u32 %v665_v25, %v606_v22  ;;  %v608_v29 = vld [vmem:[#allocation3 + $0x58] sm:$0xf0]  ;;  %82 = vperm.xlu0 %677, %v68_v27   ;;  %vm176_vm1 = vcmask 490496  }
  0x10   :  { %257 = vmatpush.bf16.msra.mxu3 %v194_v23  ;;  %v582_v30 = vld [vmem:[#allocation3 + $0x20] sm:$0xf]  ;;  %v660_v31 = vld [vmem:[#allocation3 + $0x2c] sm:$0xf0]  ;;  %v611_v32 = vor.u32 %v663_v26, %v608_v29  ;;  %v658_v33 = vld [vmem:[#allocation3 + $0x24] sm:$0xf] }
  0x11   :  { %v584_v34 = vld [vmem:[#allocation3 + $0x30] sm:$0xf0]  ;;  %v590_v35 = vld [vmem:[#allocation3 + $0x28] sm:$0xf]  ;;  %v583_v36 = vor.u32 %v660_v31, %v582_v30  ;;  %v661_v37 = vld [vmem:[#allocation3 + $0x34] sm:$0xf0] }
  0x12   :  { %201 = vmatpush.bf16.msra.mxu0 %v599_v20  ;;  %v659_v38 = vld [vmem:[#allocation3 + $0x2c] sm:$0xf]  ;;  %v592_v39 = vld [vmem:[#allocation3 + $0x38] sm:$0xf0]  ;;  %220 = vmatpush.bf16.msra.mxu1 %v603_v24  ;;  %v587_v40 = vor.u32 %v658_v33, %v584_v34  ;;  %v591_v41 = vor.u32 %v661_v37, %v590_v35  ;;  %v566_v42 = vld [vmem:[#allocation3] sm:$0xf] }
  0x13   :  { %239 = vmatpush.bf16.msra.mxu2 %v607_v28  ;;  %v656_v43 = vld [vmem:[#allocation3 + $0xc] sm:$0xf0]  ;;  %v654_v44 = vld [vmem:[#allocation3 + $0x4] sm:$0xf]  ;;  %v595_v45 = vor.u32 %v659_v38, %v592_v39  ;;  %v568_v46 = vld [vmem:[#allocation3 + $0x10] sm:$0xf0] }
  0x14   :  { %258 = vmatpush.bf16.msra.mxu3 %v611_v32  ;;  %v574_v47 = vld [vmem:[#allocation3 + $0x8] sm:$0xf]  ;;  %v657_v48 = vld [vmem:[#allocation3 + $0x14] sm:$0xf0]  ;;  %v655_v49 = vld [vmem:[#allocation3 + $0xc] sm:$0xf]  ;;  %v567_v52 = vor.u32 %v656_v43, %v566_v42  ;;  %v571_v54 = vor.u32 %v654_v44, %v568_v46 }
  0x15   :  { %v576_v50 = vld [vmem:[#allocation3 + $0x18] sm:$0xf0]  ;;  %v575_v55 = vor.u32 %v657_v48, %v574_v47  ;;  %v302_v58 = vld [vmem:[%s864_s4 + $0x10] sm:$0xff]  ;;  %v67_v59 = vld [vmem:[%s862_s2 + $0x8] sm:$0xff]  ;;  %vm334_vm2 = vcmask 261120   ;;  %vm527_vm3 = vcmask 1040384  }
  0x16   :  { %v69_v51 = vld [vmem:[%s862_s2 + $0x18] sm:$0xff]  ;;  %202 = vmatpush.bf16.msra.mxu0 %v583_v36  ;;  %v66_v53 = vld [vmem:[%s862_s2] sm:$0xff]  ;;  %221 = vmatpush.bf16.msra.mxu1 %v587_v40  ;;  %v579_v56 = vor.u32 %v655_v49, %v576_v50  ;;  %v434_v60 = vld [vmem:[%s865_s5 + $0x8] sm:$0xff]  ;;  %vm529_vm4 = vcmask 1042434   ;;  %s546_s14 = sshll.u32 %s867_s7, 4  ;;  %vm531_vm5 = vcmask 1041408   ;;  %s547_s14 = int_to_ptr.hbm [resolvable:$true] %s546_s14 }
  0x17   :  { %240 = vmatpush.bf16.msra.mxu2 %v591_v41  ;;  %87 = vperm.xlu0 %677, %v69_v51   ;;  %v652_v57 = vld [vmem:[%s861_s1] sm:$0xff]  ;;  %v303_v61 = vld [vmem:[%s864_s4 + $0x18] sm:$0xff]  ;;  %v653_v62 = vld [vmem:[%s861_s1 + $0x8] sm:$0xff] }
  0x18   :  { %259 = vmatpush.bf16.msra.mxu3 %v595_v45  ;;  %72 = vperm.xlu1 %678, %v66_v53   ;;  %v509_v63 = vld [vmem:[#allocation2] sm:$0x1]  ;;  %v435_v0 = vld [vmem:[%s865_s5 + $0x10] sm:$0xff] }
  0x19   :  { %v300_v38 = vld [vmem:[%s864_s4] sm:$0xff] }
  0x1a   :  { %203 = vmatpush.bf16.msra.mxu0 %v567_v52  ;;  %222 = vmatpush.bf16.msra.mxu1 %v571_v54  ;;  %v670_v51 = vld [vmem:[%s863_s3] sm:$0xff] }
  0x1b   :  { %241 = vmatpush.bf16.msra.mxu2 %v575_v55  ;;  %306 = vperm.xlu2 %679, %v300_v38  }
  0x1c   :  { %260 = vmatpush.bf16.msra.mxu3 %v579_v56 }
  0x1d   :  { %628 = vmatmul.msk.bf16.vlgmr.msra.gmra.mxu0 %vm176_vm1, %v652_v57  ;;  %630 = vmatmul.msk.bf16.vlgmr.msra.gmra.mxu1 %vm176_vm1, %v652_v57 }
  0x1e   :  { %632 = vmatmul.msk.bf16.vlgmr.msra.gmra.mxu2 %vm176_vm1, %v652_v57 }
  0x1f   :  { %634 = vmatmul.msk.bf16.vlgmr.msra.gmra.mxu3 %vm176_vm1, %v652_v57  ;;  %316 = vperm.xlu0 %677, %v302_v58  }
  0x20   :  { %77 = vperm.xlu1 %678, %v67_v59   ;;  %v301_v59 = vld [vmem:[%s864_s4 + $0x8] sm:$0xff] }
  0x23   :  { %311 = vperm.xlu2 %679, %v301_v59  }
  0x27   :  { %444 = vperm.xlu0 %677, %v434_v60  }
  0x28   :  { %321 = vperm.xlu1 %678, %v303_v61  }
  0x2d   :  { %629 = vmatmul.msk.bf16.gmra.mxu0 %vm176_vm1, %v653_v62  ;;  %631 = vmatmul.msk.bf16.gmra.mxu1 %vm176_vm1, %v653_v62 }
  0x2e   :  { %633 = vmatmul.msk.bf16.gmra.mxu2 %vm176_vm1, %v653_v62 }
  0x2f   :  { %635 = vmatmul.msk.bf16.gmra.mxu3 %vm176_vm1, %v653_v62  ;;  %512 = vperm.xlu0 %677, %v509_v63  }
  0x30   :  { %449 = vperm.xlu1 %678, %v435_v0   ;;  %v433_v0 = vld [vmem:[%s865_s5] sm:$0xff] }
  0x31   :  { %439 = vperm.xlu2 %679, %v433_v0  }
  0x81   :  { %v83_v7 = vpop.permute.xlu0 %82 }
  0x89   :  { %v88_v13 = vpop.permute.xlu0 %87 }
  0x8a   :  { %v73_v8 = vpop.permute.xlu1 %72 }
  0x92   :  { %v78_v14 = vpop.permute.xlu1 %77 }
  0x9a   :  { %v205_v1 = vpop.f32.mrf.mxu0  ;;  %v224_v2 = vpop.f32.mrf.mxu1 }
  0x9b   :  { %v206_v22 = vadd.f32 %v205_v1, %v73_v8  ;;  %v225_v25 = vadd.f32 %v224_v2, %v73_v8  ;;  %v671_v1 = vld [vmem:[%s863_s3 + $0x8] sm:$0xff]  ;;  %v436_v2 = vld [vmem:[%s865_s5 + $0x18] sm:$0xff]  ;;  %s736_s3 = smov [#allocation6]  }
  0x9c   :  { %454 = vperm.xlu2 %679, %v436_v2   ;;  %s544_s5 = sshll.u32 %s736_s3, 4  ;;  %s545_s5 = int_to_ptr.vmem [resolvable:$true] %s544_s5 }
  0x9d   :  { %v272_v32 = vmax.f32 %v206_v22, 0.0  ;;  %v273_v36 = vmax.f32 %v225_v25, 0.0 }
  0xa1   :  { %v243_v3 = vpop.f32.mrf.mxu2 }
  0xa2   :  { %v262_v4 = vpop.f32.mrf.mxu3  ;;  %v207_v5 = vpop.f32.mrf.mxu0  ;;  %v244_v47 = vadd.f32 %v243_v3, %v73_v8 }
  0xa3   :  { %v226_v6 = vpop.f32.mrf.mxu1  ;;  %v208_v23 = vadd.f32 %v207_v5, %v78_v14  ;;  %v263_v52 = vadd.f32 %v262_v4, %v73_v8  ;;  %v307_v3 = vpop.permute.xlu2 %306 }
  0xa4   :  { %v227_v26 = vadd.f32 %v226_v6, %v78_v14  ;;  %v274_v60 = vmax.f32 %v244_v47, 0.0 }
  0xa5   :  { %v276_v33 = vmax.f32 %v208_v23, 0.0  ;;  %v275_v61 = vmax.f32 %v263_v52, 0.0 }
  0xa6   :  { %v277_v37 = vmax.f32 %v227_v26, 0.0 }
  0xa7   :  { %v292_v46 = vpack.c.bf16 %v276_v33, %v272_v32 }
  0xa8   :  { %v293_v50 = vpack.c.bf16 %v277_v37, %v273_v36 }
  0xa9   :  { %v245_v9 = vpop.f32.mrf.mxu2 }
  0xaa   :  { %v264_v10 = vpop.f32.mrf.mxu3  ;;  %v210_v11 = vpop.f32.mrf.mxu0  ;;  %v246_v41 = vadd.f32 %v245_v9, %v78_v14 }
  0xab   :  { %v229_v12 = vpop.f32.mrf.mxu1  ;;  %v211_v15 = vadd.f32 %v210_v11, %v83_v7  ;;  %v265_v44 = vadd.f32 %v264_v10, %v78_v14  ;;  %v312_v6 = vpop.permute.xlu2 %311 }
  0xac   :  { %v230_v17 = vadd.f32 %v229_v12, %v83_v7  ;;  %v278_v55 = vmax.f32 %v246_v41, 0.0  ;;  %v317_v9 = vpop.permute.xlu0 %316  ;;  %v851_v12 = vpop.permute.xlu1 %321 }
  0xad   :  { %v280_v27 = vmax.f32 %v211_v15, 0.0  ;;  %v279_v57 = vmax.f32 %v265_v44, 0.0 }
  0xae   :  { %v281_v29 = vmax.f32 %v230_v17, 0.0  ;;  %v294_v62 = vpack.c.bf16 %v278_v55, %v274_v60 }
  0xaf   :  { %v295_v63 = vpack.c.bf16 %v279_v57, %v275_v61 }
  0xb1   :  { %v248_v16 = vpop.f32.mrf.mxu2 }
  0xb2   :  { %v267_v18 = vpop.f32.mrf.mxu3  ;;  %v212_v19 = vpop.f32.mrf.mxu0  ;;  %v249_v34 = vadd.f32 %v248_v16, %v83_v7 }
  0xb3   :  { %v213_v20 = vadd.f32 %v212_v19, %v88_v13  ;;  %v231_v21 = vpop.f32.mrf.mxu1  ;;  %v268_v39 = vadd.f32 %v267_v18, %v83_v7  ;;  %v440_v19 = vpop.permute.xlu2 %439 }
  0xb4   :  { %v232_v24 = vadd.f32 %v231_v21, %v88_v13  ;;  %v282_v48 = vmax.f32 %v249_v34, 0.0  ;;  %v450_v34 = vpop.permute.xlu1 %449 }
  0xb5   :  { %v284_v28 = vmax.f32 %v213_v20, 0.0  ;;  %v283_v53 = vmax.f32 %v268_v39, 0.0 }
  0xb6   :  { %v285_v30 = vmax.f32 %v232_v24, 0.0 }
  0xb7   :  { %v296_v31 = vpack.c.bf16 %v284_v28, %v280_v27 }
  0xb8   :  { %v297_v35 = vpack.c.bf16 %v285_v30, %v281_v29  ;;  %v445_v29 = vpop.permute.xlu0 %444 }
  0xb9   :  { %v250_v40 = vpop.f32.mrf.mxu2  ;;  %347 = vmatpush.bf16.msrb.mxu0 %v296_v31 }
  0xba   :  { %v251_v42 = vadd.f32 %v250_v40, %v88_v13  ;;  %v269_v43 = vpop.f32.mrf.mxu3  ;;  %366 = vmatpush.bf16.msrb.mxu1 %v297_v35 }
  0xbb   :  { %v270_v45 = vadd.f32 %v269_v43, %v88_v13 }
  0xbc   :  { %v286_v49 = vmax.f32 %v251_v42, 0.0 }
  0xbd   :  { %v287_v54 = vmax.f32 %v270_v45, 0.0  ;;  %348 = vmatpush.bf16.msrb.mxu0 %v292_v46 }
  0xbe   :  { %367 = vmatpush.bf16.msrb.mxu1 %v293_v50  ;;  %v298_v56 = vpack.c.bf16 %v286_v49, %v282_v48 }
  0xbf   :  { %v299_v58 = vpack.c.bf16 %v287_v54, %v283_v53 }
  0xc0   :  { %385 = vmatpush.bf16.msrb.mxu2 %v298_v56  ;;  %644 = vmatmul.msk.bf16.vlgmr.msrb.gmra.mxu0 %vm334_vm2, %v670_v51 }
  0xc1   :  { %404 = vmatpush.bf16.msrb.mxu3 %v299_v58  ;;  %646 = vmatmul.msk.bf16.vlgmr.msrb.gmra.mxu1 %vm334_vm2, %v670_v51 }
  0xc4   :  { %386 = vmatpush.bf16.msrb.mxu2 %v294_v62 }
  0xc5   :  { %405 = vmatpush.bf16.msrb.mxu3 %v295_v63 }
  0xc7   :  { %648 = vmatmul.msk.bf16.vlgmr.msrb.gmra.mxu2 %vm334_vm2, %v670_v51 }
  0xc8   :  { %650 = vmatmul.msk.bf16.vlgmr.msrb.gmra.mxu3 %vm334_vm2, %v670_v51 }
  0xd0   :  { %645 = vmatmul.msk.bf16.gmra.mxu0 %vm334_vm2, %v671_v1 }
  0xd1   :  { %647 = vmatmul.msk.bf16.gmra.mxu1 %vm334_vm2, %v671_v1 }
  0xd7   :  { %649 = vmatmul.msk.bf16.gmra.mxu2 %vm334_vm2, %v671_v1 }
  0xd8   :  { %651 = vmatmul.msk.bf16.gmra.mxu3 %vm334_vm2, %v671_v1 }
  0xf6   :  { %v455_v46 = vpop.permute.xlu2 %454 }
 0x13d   :  { %v350_v4 = vpop.f32.mrf.mxu0 }
 0x13e   :  { %v369_v5 = vpop.f32.mrf.mxu1  ;;  %v351_v16 = vadd.f32 %v350_v4, %v307_v3 }
 0x13f   :  { %v370_v13 = vadd.f32 %v369_v5, %v307_v3 }
 0x140   :  { %v417_v24 = vmax.f32 %v351_v16, 0.0 }
 0x141   :  { %v418_v22 = vmax.f32 %v370_v13, 0.0 }
 0x142   :  { %v457_v36 = vmul.f32 %v440_v19, %v417_v24 }
 0x143   :  { %v458_v32 = vmul.f32 %v440_v19, %v418_v22 }
 0x145   :  { %v352_v7 = vpop.f32.mrf.mxu0 }
 0x146   :  { %v371_v8 = vpop.f32.mrf.mxu1  ;;  %v353_v17 = vadd.f32 %v352_v7, %v312_v6 }
 0x147   :  { %v372_v14 = vadd.f32 %v371_v8, %v312_v6 }
 0x148   :  { %v421_v25 = vmax.f32 %v353_v17, 0.0 }
 0x149   :  { %v422_v23 = vmax.f32 %v372_v14, 0.0 }
 0x14a   :  { %v388_v10 = vpop.f32.mrf.mxu2  ;;  %v461_v35 = vmul.f32 %v445_v29, %v421_v25 }
 0x14b   :  { %v407_v11 = vpop.f32.mrf.mxu3  ;;  %v462_v31 = vmul.f32 %v445_v29, %v422_v23  ;;  %v389_v51 = vadd.f32 %v388_v10, %v307_v3 }
 0x14c   :  { %v473_v47 = vadd.f32 %v461_v35, %v457_v36  ;;  %v408_v56 = vadd.f32 %v407_v11, %v307_v3 }
 0x14d   :  { %v355_v15 = vpop.f32.mrf.mxu0  ;;  %v482_v43 = vadd.f32 %v462_v31, %v458_v32  ;;  %v419_v63 = vmax.f32 %v389_v51, 0.0  ;;  %v534_v51 = vlaneseq }
 0x14e   :  { %v374_v18 = vpop.f32.mrf.mxu1  ;;  %v356_v21 = vadd.f32 %v355_v15, %v317_v9  ;;  %v420_v2 = vmax.f32 %v408_v56, 0.0 }
 0x14f   :  { %v375_v20 = vadd.f32 %v374_v18, %v317_v9  ;;  %v459_v13 = vmul.f32 %v440_v19, %v419_v63  ;;  %vm536_vm6 = vcmp.lt.s32.totalorder %v534_v51, 512 }
 0x150   :  { %v425_v30 = vmax.f32 %v356_v21, 0.0 }
 0x151   :  { %v426_v27 = vmax.f32 %v375_v20, 0.0 }
 0x152   :  { %v390_v26 = vpop.f32.mrf.mxu2  ;;  %v465_v41 = vmul.f32 %v450_v34, %v425_v30 }
 0x153   :  { %v409_v28 = vpop.f32.mrf.mxu3  ;;  %v466_v39 = vmul.f32 %v450_v34, %v426_v27  ;;  %v391_v44 = vadd.f32 %v390_v26, %v312_v6 }
 0x154   :  { %v410_v48 = vadd.f32 %v409_v28, %v312_v6  ;;  %v474_v57 = vadd.f32 %v473_v47, %v465_v41 }
 0x155   :  { %v357_v33 = vpop.f32.mrf.mxu0  ;;  %v483_v52 = vadd.f32 %v482_v43, %v466_v39  ;;  %v423_v59 = vmax.f32 %v391_v44, 0.0 }
 0x156   :  { %v358_v37 = vadd.f32 %v357_v33, %v851_v12  ;;  %v376_v38 = vpop.f32.mrf.mxu1  ;;  %v424_v61 = vmax.f32 %v410_v48, 0.0 }
 0x157   :  { %v377_v40 = vadd.f32 %v376_v38, %v851_v12  ;;  %v463_v5 = vmul.f32 %v445_v29, %v423_v59 }
 0x158   :  { %v429_v42 = vmax.f32 %v358_v37, 0.0  ;;  %v464_v7 = vmul.f32 %v445_v29, %v424_v61 }
 0x159   :  { %v430_v45 = vmax.f32 %v377_v40, 0.0  ;;  %v491_v18 = vadd.f32 %v463_v5, %v459_v13 }
 0x15a   :  { %v469_v49 = vmul.f32 %v455_v46, %v429_v42  ;;  %v393_v50 = vpop.f32.mrf.mxu2 }
 0x15b   :  { %v470_v53 = vmul.f32 %v455_v46, %v430_v45  ;;  %v394_v54 = vadd.f32 %v393_v50, %v317_v9  ;;  %v412_v55 = vpop.f32.mrf.mxu3 }
 0x15c   :  { %v413_v58 = vadd.f32 %v412_v55, %v317_v9  ;;  %v475_v62 = vadd.f32 %v474_v57, %v469_v49  ;;  %v460_v9 = vmul.f32 %v440_v19, %v420_v2 }
 0x15d   :  { %v484_v60 = vadd.f32 %v483_v52, %v470_v53  ;;  %v427_v1 = vmax.f32 %v394_v54, 0.0 }
 0x15e   :  { %v428_v4 = vmax.f32 %v413_v58, 0.0  ;;  %v476_v8 = vrot.slane %v475_v62, 4  ;;  %v500_v21 = vadd.f32 %v464_v7, %v460_v9 }
 0x15f   :  { %v485_v0 = vrot.slane %v484_v60, 4  ;;  %v467_v14 = vmul.f32 %v450_v34, %v427_v1 }
 0x160   :  { %v468_v16 = vmul.f32 %v450_v34, %v428_v4  ;;  %v477_v22 = vadd.f32 %v476_v8, %v475_v62 }
 0x161   :  { %v486_v6 = vadd.f32 %v485_v0, %v484_v60  ;;  %v492_v24 = vadd.f32 %v491_v18, %v467_v14 }
 0x162   :  { %v395_v10 = vpop.f32.mrf.mxu2  ;;  %v501_v27 = vadd.f32 %v500_v21, %v468_v16  ;;  %v478_v30 = vrot.slane %v477_v22, 2 }
 0x163   :  { %v396_v3 = vadd.f32 %v395_v10, %v851_v12  ;;  %v414_v11 = vpop.f32.mrf.mxu3  ;;  %v487_v15 = vrot.slane %v486_v6, 2 }
 0x164   :  { %v415_v17 = vadd.f32 %v414_v11, %v851_v12  ;;  %v479_v34 = vadd.f32 %v478_v30, %v477_v22  ;;  %v513_v12 = vpop.permute.xlu0 %512 }
 0x165   :  { %v431_v20 = vmax.f32 %v396_v3, 0.0  ;;  %v488_v26 = vadd.f32 %v487_v15, %v486_v6  ;;  %v515_v41 = vperm.slane %v513_v12, 0 }
 0x166   :  { %v432_v23 = vmax.f32 %v415_v17, 0.0  ;;  %v480_v42 = vrot.slane %v479_v34, 1 }
 0x167   :  { %v471_v25 = vmul.f32 %v455_v46, %v431_v20  ;;  %v489_v33 = vrot.slane %v488_v26, 1 }
 0x168   :  { %v472_v28 = vmul.f32 %v455_v46, %v432_v23  ;;  %v481_v48 = vadd.f32 %v480_v42, %v479_v34 }
 0x169   :  { %v493_v29 = vadd.f32 %v492_v24, %v471_v25  ;;  %v490_v38 = vadd.f32 %v489_v33, %v488_v26 }
 0x16a   :  { %v502_v31 = vadd.f32 %v501_v27, %v472_v28  ;;  %v516_v55 = vadd.f32 %v515_v41, %v481_v48 }
 0x16b   :  { %v494_v32 = vrot.slane %v493_v29, 4  ;;  %v517_v46 = vadd.f32 %v515_v41, %v490_v38 }
 0x16c   :  { %v503_v19 = vrot.slane %v502_v31, 4 }
 0x16d   :  { %v495_v35 = vadd.f32 %v494_v32, %v493_v29  ;;  %v524_v53 = vrot.slane %v517_v46, 7 }
 0x16e   :  { %v504_v36 = vadd.f32 %v503_v19, %v502_v31 }
 0x16f   :  { %v496_v37 = vrot.slane %v495_v35, 2  ;;  %v528_v57 = vsel %vm527_vm3, %v516_v55, %v524_v53 }
 0x170   :  { %v505_v39 = vrot.slane %v504_v36, 2 }
 0x171   :  { %v497_v40 = vadd.f32 %v496_v37, %v495_v35 }
 0x172   :  { %v506_v43 = vadd.f32 %v505_v39, %v504_v36 }
 0x173   :  { %v498_v44 = vrot.slane %v497_v40, 1 }
 0x174   :  { %v507_v45 = vrot.slane %v506_v43, 1 }
 0x175   :  { %v499_v47 = vadd.f32 %v498_v44, %v497_v40 }
 0x176   :  { %v508_v49 = vadd.f32 %v507_v45, %v506_v43 }
 0x177   :  { %v518_v50 = vadd.f32 %v515_v41, %v499_v47 }
 0x178   :  { %v519_v52 = vadd.f32 %v515_v41, %v508_v49 }
 0x179   :  { %v525_v54 = vrot.slane %v518_v50, 6 }
 0x17a   :  { %v526_v56 = vrot.slane %v519_v52, 5 }
 0x17c   :  { %v530_v58 = vsel %vm529_vm4, %v525_v54, %v526_v56 }
 0x17d   :  { %v532_v59 = vsel %vm531_vm5, %v528_v57, %v530_v58 }
 0x17e   :  { %538 = vst.msk [vmem:[#allocation6] sm:$0xf] %vm536_vm6, %v532_v59 }
 0x17f   :  { %549 = dma.vmem_to_hbm [thread:$0]  %s545_s5, 64, %s547_s14, [#allocation5]  }
 0x180   :  { %730 = dma.done.wait [#allocation5], 64  }
 0x181   :  { %731 = vsyncadd [#allocation5], 4294967232 }
 0x182   :  { %554 = vsyncpa [#allocation4], 1 }
 0x183   :  { %555 = vsyncpa [#allocation5], 1 }

</bundles_post_ra>
